<compile_context>
chip_gen: v7x
topology: tpu7x:2x2x1
jax: 0.10.0
libtpu: 0.0.40
codegen_flags: <defaults>
</compile_context>

<pallas_src>
import functools

import jax
import jax.numpy as jnp
from jax.experimental import pallas as pl
from jax.experimental.pallas import tpu as pltpu


LANE = 128                 # lane width (last dim of every VMEM tile)
ACC_ROWS = 512             # fixed accumulator height (decoupled from tile)
TILE_ROWS_DEFAULT = 2048   # (2048,128) f32 = 1 MiB / input / buffer (v5e/v6e)
TILE_ROWS_V7X = 4096       # 2 MiB / input / buffer for v7x's higher per-TC BW


def _tpu_is_v7x():
    """Best-effort generation check (falls back to conservative defaults)."""
    try:
        kind = jax.devices()[0].device_kind.lower()
    except Exception:
        return False
    return ("v7" in kind) or ("tpu7" in kind)


def _mse_kernel(rows_valid, tile_rows, acc_rows, steps_per_shard,
                p_ref, l_ref, o_ref, acc_ref):
    """Accumulate sum((pred - labels)^2) into a fixed-size VMEM accumulator.

    p_ref, l_ref : (tile_rows, LANE) VMEM tiles of pred / labels (input dtype)
    o_ref        : (1, 8, LANE) VMEM output block for this shard; sublane 0
                   holds the shard's per-lane partial sums (broadcast to 8
                   sublanes so the final store is (8,128)-aligned)
    acc_ref      : (acc_rows, LANE) f32 VMEM scratch, persistent across the
                   reduction axis; per-step work is pure VPU
    """
    s = pl.program_id(0)   # shard axis ("parallel": both TCs on v7x)
    k = pl.program_id(1)   # reduction axis ("arbitrary")

    @pl.when(k == 0)
    def _():
        acc_ref[...] = jnp.zeros_like(acc_ref)

    blk = s * steps_per_shard + k          # logical (unclamped) block index
    n_chunks = tile_rows // acc_rows

    def accumulate(masked):
        for c in range(n_chunks):
            r0 = c * acc_rows
            d = (p_ref[pl.ds(r0, acc_rows), :].astype(jnp.float32)
                 - l_ref[pl.ds(r0, acc_rows), :].astype(jnp.float32))
            if masked:
                # Mask BEFORE squaring so garbage (possibly NaN/Inf) in the
                # clipped / duplicated region of the VMEM tile cannot leak
                # into the accumulator.
                row_ids = jax.lax.broadcasted_iota(
                    jnp.int32, (acc_rows, LANE), 0)
                in_bounds = (blk * tile_rows + r0 + row_ids) < rows_valid
                d = jnp.where(in_bounds, d, 0.0)
            acc_ref[...] += d * d

    # Fast path: fully in-range blocks skip the iota/compare/select entirely;
    # only the ragged last block (and the clamped duplicate block on shard 1
    # when n_blocks is odd) pays for the mask.
    needs_mask = (blk + 1) * tile_rows > rows_valid

    @pl.when(jnp.logical_not(needs_mask))
    def _():
        accumulate(masked=False)

    @pl.when(needs_mask)
    def _():
        accumulate(masked=True)

    @pl.when(k == pl.num_programs(1) - 1)
    def _():
        lane_sums = jnp.sum(acc_ref[...], axis=0, keepdims=True)   # (1, LANE)
        o_ref[...] = jnp.broadcast_to(lane_sums.reshape(1, 1, LANE),
                                      (1, 8, LANE))


def pallas_mse_loss(pred, labels):
    """Scalar MSE loss computed with a Pallas TPU streaming reduction."""
    assert pred.shape == labels.shape, "pred/labels must have identical shapes"
    n = pred.size

    # Flatten row-major; keep the original dtype (cast happens in-kernel so we
    # never rewrite the full tensors in HBM).
    flat_p = pred.reshape(-1)
    flat_l = labels.reshape(-1)

    rem = n % LANE
    n_aligned = n - rem

    # Lane tail (<128 elements): tiny plain-JAX op instead of padding/copying
    # the full tensors.
    if rem:
        td = (flat_p[n_aligned:].astype(jnp.float32)
              - flat_l[n_aligned:].astype(jnp.float32))
        tail_sum = jnp.sum(td * td)
    else:
        tail_sum = jnp.float32(0.0)

    if n_aligned == 0:
        # Entire input is smaller than one lane row; no kernel needed.
        return tail_sum / jnp.float32(n)

    rows = n_aligned // LANE
    if rem:
        p_al = flat_p[:n_aligned]
        l_al = flat_l[:n_aligned]
    else:
        p_al, l_al = flat_p, flat_l
    p2 = p_al.reshape(rows, LANE)
    l2 = l_al.reshape(rows, LANE)

    # Generation-aware sizing.
    is_v7x = _tpu_is_v7x()
    tile_rows_max = TILE_ROWS_V7X if is_v7x else TILE_ROWS_DEFAULT
    tile_rows = rows if rows <= tile_rows_max else tile_rows_max
    # Fixed-size accumulator whenever the tile divides evenly; small/odd tiles
    # fall back to a tile-shaped accumulator (cheap there anyway).
    acc_rows = ACC_ROWS if tile_rows % ACC_ROWS == 0 else tile_rows
    n_blocks = pl.cdiv(rows, tile_rows)

    # 2-way "parallel" shard axis only on v7x (2 TensorCores); on single-TC
    # chips it would just be a serial loop with duplicated-block overhead.
    num_shards = 2 if (is_v7x and n_blocks >= 2) else 1
    steps_per_shard = pl.cdiv(n_blocks, num_shards)

    def in_map(s, k):
        # Clamp so the DMA never addresses past the last real block; the
        # kernel masks the duplicated contribution to zero.
        return (jnp.minimum(s * steps_per_shard + k, n_blocks - 1), 0)

    in_spec = pl.BlockSpec((tile_rows, LANE), in_map)
    if is_v7x and hasattr(pl, "Buffered"):
        # Deeper input pipeline on v7x: hides step-boundary DMA-issue bubbles.
        try:
            in_spec = pl.BlockSpec((tile_rows, LANE), in_map,
                                   pipeline_mode=pl.Buffered(3))
        except TypeError:
            pass  # older API without pipeline_mode: keep default 2-deep

    kernel = functools.partial(_mse_kernel, rows, tile_rows, acc_rows,
                               steps_per_shard)

    itemsize = jnp.dtype(pred.dtype).itemsize
    cost = pl.CostEstimate(
        flops=3 * n_aligned,
        transcendentals=0,
        bytes_accessed=2 * n_aligned * itemsize + num_shards * 8 * LANE * 4,
    )

    out = pl.pallas_call(
        kernel,
        out_shape=jax.ShapeDtypeStruct((num_shards, 8, LANE), jnp.float32),
        grid_spec=pltpu.PrefetchScalarGridSpec(
            num_scalar_prefetch=0,
            grid=(num_shards, steps_per_shard),
            in_specs=[in_spec, in_spec],
            out_specs=pl.BlockSpec((1, 8, LANE), lambda s, k: (s, 0, 0)),
            scratch_shapes=[pltpu.VMEM((acc_rows, LANE), jnp.float32)],
        ),
        compiler_params=pltpu.CompilerParams(
            dimension_semantics=("parallel", "arbitrary"),
        ),
        cost_estimate=cost,
    )(p2, l2)

    # Sublane 0 of each shard's block holds that shard's per-lane partial sums.
    kernel_sum = jnp.sum(out[:, 0, :])
    return (kernel_sum + tail_sum) / jnp.float32(n)


class LossWrapper:
    """JAX/Pallas port of the abstract PyTorch `LossWrapper` interface.

    Subclasses override `forward(pred, labels)`.  The base class mirrors the
    PyTorch contract (raise if not overridden); `MSELossWrapper` below is the
    concrete default used for the demo.
    """

    def __init__(self, *args, **kwargs):
        pass

    def forward(self, pred, labels):
        raise NotImplementedError("该方法必须实现")

    def __call__(self, pred, labels):
        return self.forward(pred, labels)


class MSELossWrapper(LossWrapper):
    def forward(self, pred, labels):
        return pallas_mse_loss(pred, labels)


if __name__ == "__main__":
    key = jax.random.PRNGKey(0)
    k_pred, k_lab = jax.random.split(key)

    loss_fn = MSELossWrapper()

    # Small NCHW-shaped pred/labels consistent with a typical loss call
    # (numel is a multiple of 128: pure kernel path, no tail).
    shape = (2, 4, 16, 16)
    pred = jax.random.normal(k_pred, shape, dtype=jnp.float32)
    labels = jax.random.normal(k_lab, shape, dtype=jnp.float32)
    loss = jax.block_until_ready(loss_fn(pred, labels))
    ref = jnp.mean((pred - labels) ** 2)
    assert jnp.allclose(loss, ref, rtol=1e-5, atol=1e-6), (loss, ref)

    # Ragged shape (numel % 128 != 0) exercises the lane-tail path.
    shape2 = (1, 3, 17, 9)
    k2p, k2l = jax.random.split(k_lab)
    pred2 = jax.random.normal(k2p, shape2, dtype=jnp.float32)
    labels2 = jax.random.normal(k2l, shape2, dtype=jnp.float32)
    loss2 = jax.block_until_ready(loss_fn(pred2, labels2))
    ref2 = jnp.mean((pred2 - labels2) ** 2)
    assert jnp.allclose(loss2, ref2, rtol=1e-5, atol=1e-6), (loss2, ref2)

    print("KERNEL_OK")
</pallas_src>

<mosaic_0001>
module attributes {stable_mosaic.version = 11 : i64} {
  func.func @_mse_kernel(%arg0: i32, %arg1: i32, %arg2: memref<16x128xf32, #tpu.memory_space<vmem>>, %arg3: memref<16x128xf32, #tpu.memory_space<vmem>>, %arg4: memref<1x8x128xf32, #tpu.memory_space<vmem>>, %arg5: memref<16x128xf32, #tpu.memory_space<vmem>>) attributes {dimension_semantics = [#tpu.dimension_semantics<parallel>, #tpu.dimension_semantics<arbitrary>], iteration_bounds = array<i64: 1, 1>, scalar_prefetch = 0 : i64, scratch_operands = 1 : i64, tpu.core_type = #tpu.core_type<tc>, window_params = [{transform_indices = @transform_0, window_bounds = array<i64: 16, 128>}, {transform_indices = @transform_1, window_bounds = array<i64: 16, 128>}, {transform_indices = @transform_2, window_bounds = array<i64: 1, 8, 128>}]} {
    %c0_i32 = arith.constant 0 : i32
    %0 = arith.cmpi eq, %arg1, %c0_i32 : i32
    %1 = arith.extui %0 : i1 to i32
    %c0_i32_0 = arith.constant 0 : i32
    %2 = arith.cmpi ne, %1, %c0_i32_0 : i32
    scf.if %2 {
      %cst = arith.constant 0.000000e+00 : f32
      %16 = vector.broadcast %cst : f32 to vector<16x128xf32>
      %c0 = arith.constant 0 : index
      %c0_7 = arith.constant 0 : index
      %17 = vector.load %arg5[%c0, %c0_7] : memref<16x128xf32, #tpu.memory_space<vmem>>, vector<16x128xf32>
      tpu.vector_store %arg5[%c0, %c0_7], %16 {strides = array<i32>} : memref<16x128xf32, #tpu.memory_space<vmem>>, vector<16x128xf32>,
    } else {
    }
    %c1_i32 = arith.constant 1 : i32
    %3 = arith.muli %arg0, %c1_i32 : i32
    %4 = arith.addi %3, %arg1 : i32
    %c1_i32_1 = arith.constant 1 : i32
    %5 = arith.addi %4, %c1_i32_1 : i32
    %c16_i32 = arith.constant 16 : i32
    %6 = arith.muli %5, %c16_i32 : i32
    %c16_i32_2 = arith.constant 16 : i32
    %7 = arith.cmpi sgt, %6, %c16_i32_2 : i32
    %true = arith.constant true
    %8 = arith.xori %7, %true : i1
    %9 = arith.extui %8 : i1 to i32
    %c0_i32_3 = arith.constant 0 : i32
    %10 = arith.cmpi ne, %9, %c0_i32_3 : i32
    scf.if %10 {
      %c0 = arith.constant 0 : index
      %c0_7 = arith.constant 0 : index
      %16 = vector.load %arg2[%c0, %c0_7] : memref<16x128xf32, #tpu.memory_space<vmem>>, vector<16x128xf32>
      %c0_8 = arith.constant 0 : index
      %c0_9 = arith.constant 0 : index
      %17 = vector.load %arg3[%c0_8, %c0_9] : memref<16x128xf32, #tpu.memory_space<vmem>>, vector<16x128xf32>
      %18 = arith.subf %16, %17 : vector<16x128xf32>
      %c0_10 = arith.constant 0 : index
      %c0_11 = arith.constant 0 : index
      %19 = vector.load %arg5[%c0_10, %c0_11] : memref<16x128xf32, #tpu.memory_space<vmem>>, vector<16x128xf32>
      %20 = arith.mulf %18, %18 : vector<16x128xf32>
      %21 = arith.addf %19, %20 : vector<16x128xf32>
      %c0_12 = arith.constant 0 : index
      %c0_13 = arith.constant 0 : index
      %22 = vector.load %arg5[%c0_12, %c0_13] : memref<16x128xf32, #tpu.memory_space<vmem>>, vector<16x128xf32>
      tpu.vector_store %arg5[%c0_12, %c0_13], %21 {strides = array<i32>} : memref<16x128xf32, #tpu.memory_space<vmem>>, vector<16x128xf32>,
    } else {
    }
    %11 = arith.extui %7 : i1 to i32
    %c0_i32_4 = arith.constant 0 : i32
    %12 = arith.cmpi ne, %11, %c0_i32_4 : i32
    scf.if %12 {
      %c0 = arith.constant 0 : index
      %c0_7 = arith.constant 0 : index
      %16 = vector.load %arg2[%c0, %c0_7] : memref<16x128xf32, #tpu.memory_space<vmem>>, vector<16x128xf32>
      %c0_8 = arith.constant 0 : index
      %c0_9 = arith.constant 0 : index
      %17 = vector.load %arg3[%c0_8, %c0_9] : memref<16x128xf32, #tpu.memory_space<vmem>>, vector<16x128xf32>
      %18 = arith.subf %16, %17 : vector<16x128xf32>
      %19 = tpu.iota {dimensions = array<i32: 0>} : vector<16x128xi32>
      %c16_i32_10 = arith.constant 16 : i32
      %20 = arith.muli %4, %c16_i32_10 : i32
      %c0_i32_11 = arith.constant 0 : i32
      %21 = arith.addi %20, %c0_i32_11 : i32
      %22 = vector.broadcast %21 : i32 to vector<16x128xi32>
      %23 = arith.addi %22, %19 : vector<16x128xi32>
      %c16_i32_12 = arith.constant 16 : i32
      %24 = vector.broadcast %c16_i32_12 : i32 to vector<16x128xi32>
      %25 = arith.cmpi slt, %23, %24 : vector<16x128xi32>
      %cst = arith.constant 0.000000e+00 : f32
      %26 = vector.broadcast %cst : f32 to vector<16x128xf32>
      %27 = arith.select %25, %18, %26 : vector<16x128xi1>, vector<16x128xf32>
      %c0_13 = arith.constant 0 : index
      %c0_14 = arith.constant 0 : index
      %28 = vector.load %arg5[%c0_13, %c0_14] : memref<16x128xf32, #tpu.memory_space<vmem>>, vector<16x128xf32>
      %29 = arith.mulf %27, %27 : vector<16x128xf32>
      %30 = arith.addf %28, %29 : vector<16x128xf32>
      %c0_15 = arith.constant 0 : index
      %c0_16 = arith.constant 0 : index
      %31 = vector.load %arg5[%c0_15, %c0_16] : memref<16x128xf32, #tpu.memory_space<vmem>>, vector<16x128xf32>
      tpu.vector_store %arg5[%c0_15, %c0_16], %30 {strides = array<i32>} : memref<16x128xf32, #tpu.memory_space<vmem>>, vector<16x128xf32>,
    } else {
    }
    %c0_i32_5 = arith.constant 0 : i32
    %13 = arith.cmpi eq, %arg1, %c0_i32_5 : i32
    %14 = arith.extui %13 : i1 to i32
    %c0_i32_6 = arith.constant 0 : i32
    %15 = arith.cmpi ne, %14, %c0_i32_6 : i32
    scf.if %15 {
      %c0 = arith.constant 0 : index
      %c0_7 = arith.constant 0 : index
      %16 = vector.load %arg5[%c0, %c0_7] : memref<16x128xf32, #tpu.memory_space<vmem>>, vector<16x128xf32>
      %cst = arith.constant dense<0.000000e+00> : vector<128xf32>
      %17 = vector.multi_reduction <add>, %16, %cst [0] : vector<16x128xf32> to vector<128xf32>
      %18 = vector.shape_cast %17 : vector<128xf32> to vector<1x128xf32>
      %19 = vector.shape_cast %18 : vector<1x128xf32> to vector<1x1x128xf32>
      %20 = vector.shape_cast %19 : vector<1x1x128xf32> to vector<1x1x128xf32>
      %21 = vector.broadcast %20 : vector<1x1x128xf32> to vector<1x8x128xf32>
      %c0_8 = arith.constant 0 : index
      %c0_9 = arith.constant 0 : index
      %c0_10 = arith.constant 0 : index
      %22 = vector.load %arg4[%c0_8, %c0_9, %c0_10] : memref<1x8x128xf32, #tpu.memory_space<vmem>>, vector<1x8x128xf32>
      tpu.vector_store %arg4[%c0_8, %c0_9, %c0_10], %21 {strides = array<i32>} : memref<1x8x128xf32, #tpu.memory_space<vmem>>, vector<1x8x128xf32>,
    } else {
    }
    return
  }
  func.func @transform_0(%arg0: i32, %arg1: i32) -> (i32, i32) {
    %c1_i32 = arith.constant 1 : i32
    %0 = arith.muli %arg0, %c1_i32 : i32
    %1 = arith.addi %0, %arg1 : i32
    %c0_i32 = arith.constant 0 : i32
    %2 = arith.minsi %1, %c0_i32 : i32
    %c0_i32_0 = arith.constant 0 : i32
    %c0_i32_1 = arith.constant 0 : i32
    return %2, %c0_i32_0 : i32, i32
  }
  func.func @transform_1(%arg0: i32, %arg1: i32) -> (i32, i32) {
    %c1_i32 = arith.constant 1 : i32
    %0 = arith.muli %arg0, %c1_i32 : i32
    %1 = arith.addi %0, %arg1 : i32
    %c0_i32 = arith.constant 0 : i32
    %2 = arith.minsi %1, %c0_i32 : i32
    %c0_i32_0 = arith.constant 0 : i32
    %c0_i32_1 = arith.constant 0 : i32
    return %2, %c0_i32_0 : i32, i32
  }
  func.func @transform_2(%arg0: i32, %arg1: i32) -> (i32, i32, i32) {
    %c0_i32 = arith.constant 0 : i32
    %c0_i32_0 = arith.constant 0 : i32
    %c0_i32_1 = arith.constant 0 : i32
    return %arg0, %c0_i32, %c0_i32_0 : i32, i32, i32
  }
}

</mosaic_0001>

<bundles_post_ra>
// kernel: tpu_custom_call.1
= control target key start
LH: loop header
LB: loop body
LE: loop exit
PB: predicated region body
PF: predicated region fallthrough
CT: control target
= control target key end

     0   :  { %7 = vsyncpa [#allocation4], 0  ;;  %s282_s0 = inlined_call_operand.hbm [shape: f32[16,128], index: 0, kind: input, shape index: {}]   ;;  %s283_s1 = inlined_call_operand.hbm [shape: f32[16,128], index: 1, kind: input, shape index: {}]   ;;  %s284_s2 = inlined_call_operand.hbm [shape: f32[1,8,128], index: 2, kind: output, shape index: {}]  }
   0x1   :  { %8 = vsyncpa [#allocation7], 0 }
   0x2   :  { %9 = vsyncpa [#allocation5], 0  ;;  %s226_s9 = smov [#allocation3]   ;;  %s154_s13 = scalar_lea.hbm %s282_s0, 256 }
   0x3   :  { %s21_s10 = sshll.u32 %s226_s9, 4  ;;  %p155_p0 = scmp.ne.s32.totalorder %s282_s0, %s154_s13  ;;  %s22_s10 = int_to_ptr.vmem [resolvable:$true] %s21_s10 }
   0x4   :  { %p158_p1 = scmp.lt.u32.totalorder %s154_s13, %s282_s0 }
   0x6   :  { %p160_p2 = pnand %p158_p1, %p155_p0 }
   0x8   :  { %163 = shalt.err (!%p160_p2)
}
   0x9   :  { %s164_s18 = scalar_lea.vmem %s22_s10, 256  ;;  %p169_p4 = scmp.lt.s32.totalorder %s22_s10, %s22_s10 }
   0xa   :  { %p165_p3 = scmp.ne.s32.totalorder %s22_s10, %s164_s18  ;;  %p170_p5 = scmp.lt.s32.totalorder %s164_s18, %s164_s18 }
   0xc   :  { %p171_p6 = por %p170_p5, %p169_p4 }
   0xe   :  { %p172_p7 = pnand %p171_p6, %p165_p3 }
  0x10   :  { %175 = shalt.err (!%p172_p7)
}
  0x11   :  { %s227_s19 = smov 128   ;;  %s228_s20 = smov 8  }
  0x12   :  { %27 = dma.hbm_to_vmem [thread:$0]  %s282_s0, 256, %s22_s10, [#allocation4], %s227_s19, %s227_s19, %s228_s20  }
  0x13   :  { %s229_s23 = smov [#allocation6]   ;;  %s176_s27 = scalar_lea.hbm %s283_s1, 256 }
  0x14   :  { %s39_s24 = sshll.u32 %s229_s23, 4  ;;  %p177_p8 = scmp.ne.s32.totalorder %s283_s1, %s176_s27  ;;  %s40_s24 = int_to_ptr.vmem [resolvable:$true] %s39_s24 }
  0x15   :  { %p180_p9 = scmp.lt.u32.totalorder %s176_s27, %s283_s1 }
  0x17   :  { %p182_p10 = pnand %p180_p9, %p177_p8 }
  0x19   :  { %185 = shalt.err (!%p182_p10)
}
  0x1a   :  { %s186_s4 = scalar_lea.vmem %s40_s24, 256  ;;  %p191_p12 = scmp.lt.s32.totalorder %s40_s24, %s40_s24 }
  0x1b   :  { %p187_p11 = scmp.ne.s32.totalorder %s40_s24, %s186_s4  ;;  %p192_p13 = scmp.lt.s32.totalorder %s186_s4, %s186_s4 }
  0x1d   :  { %p193_p0 = por %p192_p13, %p191_p12 }
  0x1f   :  { %p194_p1 = pnand %p193_p0, %p187_p11 }
  0x21   :  { %197 = shalt.err (!%p194_p1)
}
  0x22   :  { %45 = dma.hbm_to_vmem [thread:$0]  %s283_s1, 256, %s40_s24, [#allocation7], %s227_s19, %s227_s19, %s228_s20  }
  0x23   :  { %220 = dma.done.wait [#allocation4], 256  }
  0x24   :  { %221 = vsyncadd [#allocation4], 4294967040 }
  0x25   :  { %222 = dma.done.wait [#allocation7], 256  }
  0x26   :  { %223 = vsyncadd [#allocation7], 4294967040  ;;  %v74_v0 = vld [vmem:[#allocation3] sm:$0xff]  ;;  %v75_v1 = vld [vmem:[#allocation3 + $0x8] sm:$0xff]  ;;  %s230_s6 = smov [#allocation8]  }
  0x27   :  { %v76_v2 = vld [vmem:[#allocation6] sm:$0xff]  ;;  %v77_v3 = vld [vmem:[#allocation6 + $0x8] sm:$0xff]  ;;  %s135_s7 = sshll.u32 %s230_s6, 4  ;;  %s136_s7 = int_to_ptr.vmem [resolvable:$true] %s135_s7 }
  0x28   :  { %v78_v4 = vsub.f32 %v74_v0, %v76_v2  ;;  %v79_v5 = vsub.f32 %v75_v1, %v77_v3  ;;  %s198_s1 = scalar_lea.vmem %s136_s7, 128  ;;  %p203_p3 = scmp.lt.s32.totalorder %s136_s7, %s136_s7 }
  0x29   :  { %p199_p2 = scmp.ne.s32.totalorder %s136_s7, %s198_s1  ;;  %p204_p4 = scmp.lt.s32.totalorder %s198_s1, %s198_s1 }
  0x2a   :  { %v82_v6 = vmul.f32 %v78_v4, %v78_v4  ;;  %v83_v7 = vmul.f32 %v79_v5, %v79_v5 }
  0x2b   :  { %p205_p5 = por %p204_p4, %p203_p3 }
  0x2c   :  { %v121_v8 = vadd.f32 %v83_v7, %v82_v6 }
  0x2d   :  { %p206_p6 = pnand %p205_p5, %p199_p2 }
  0x2e   :  { %v122_v9 = vrot.slane %v121_v8, 4 }
  0x30   :  { %v123_v10 = vadd.f32 %v122_v9, %v121_v8 }
  0x32   :  { %v124_v11 = vrot.slane %v123_v10, 2 }
  0x34   :  { %v125_v12 = vadd.f32 %v124_v11, %v123_v10 }
  0x36   :  { %v126_v13 = vrot.slane %v125_v12, 1 }
  0x38   :  { %v127_v14 = vadd.f32 %v126_v13, %v125_v12 }
  0x3a   :  { %128 = vst [vmem:[#allocation8] sm:$0xff] %v127_v14 }
  0x3b   :  { %209 = shalt.err (!%p206_p6)
}
  0x3c   :  { %s210_s10 = scalar_lea.hbm %s284_s2, 128 }
  0x3d   :  { %p211_p7 = scmp.ne.s32.totalorder %s284_s2, %s210_s10  ;;  %p214_p8 = scmp.lt.u32.totalorder %s210_s10, %s284_s2 }
  0x3f   :  { %p216_p9 = pnand %p214_p8, %p211_p7 }
  0x41   :  { %219 = shalt.err (!%p216_p9)
}
  0x42   :  { %138 = dma.vmem_to_hbm [thread:$0]  %s136_s7, 128, %s284_s2, [#allocation5]  }
  0x43   :  { %224 = dma.done.wait [#allocation5], 128  }
  0x44   :  { %225 = vsyncadd [#allocation5], 4294967168 }
  0x45   :  { %142 = vsyncpa [#allocation4], 1 }
  0x46   :  { %143 = vsyncpa [#allocation7], 1 }
  0x47   :  { %144 = vsyncpa [#allocation5], 1 }

</bundles_post_ra>
